<compile_context>
chip_gen: v7x
topology: tpu7x:2x2x1
jax: 0.10.0
libtpu: 0.0.40
codegen_flags: <defaults>
</compile_context>

<pallas_src>
import jax
import jax.numpy as jnp
from jax.experimental import pallas as pl
from jax.experimental.pallas import tpu as pltpu


def transformer_kernel(pos_ref, wqkv_ref, wfc_ref, bfc_ref, out_ref):
    # pos_ref already holds emb + positional encoding (pre-added in the wrapper)
    pos = pos_ref[...]                                                 # [S, E] f32
    S, E = pos.shape
    pos_bf = pos.astype(jnp.bfloat16)

    # fused QKV projection (Linear, no bias): one wide bf16 matmul, f32 accum
    qkv = jnp.dot(pos_bf, wqkv_ref[...],
                  preferred_element_type=jnp.float32)                  # [S, 3E] f32
    q = qkv[:, 0 * E:1 * E]
    k = qkv[:, 1 * E:2 * E]
    v = qkv[:, 2 * E:3 * E]

    # sim = q @ k.T without materializing the transpose (contract last dims)
    sim = jax.lax.dot_general(
        q.astype(jnp.bfloat16), k.astype(jnp.bfloat16),
        dimension_numbers=(((1,), (1,)), ((), ())),
        preferred_element_type=jnp.float32)                            # [S, S] f32

    # causal mask (strictly above the diagonal) built in-kernel: pure VPU work,
    # no [S,S] HBM->VMEM DMA, no extra VMEM-resident input block.
    row = jax.lax.broadcasted_iota(jnp.int32, (S, S), 0)
    col = jax.lax.broadcasted_iota(jnp.int32, (S, S), 1)
    sim = jnp.where(col > row, jnp.float32(-1e9), sim)

    # softmax along dim=0 (as the PyTorch module does), all f32.
    # pl.reciprocal(approx=True): EUP slot, ~1e-3 relative vs exact softmax.
    m = jnp.max(sim, axis=0, keepdims=True)
    e = jnp.exp(sim - m)
    p = e * pl.reciprocal(jnp.sum(e, axis=0, keepdims=True), approx=True)

    attn = jnp.dot(p.astype(jnp.bfloat16), v.astype(jnp.bfloat16),
                   preferred_element_type=jnp.float32)                 # [S, E] f32

    res = attn + pos                                                   # residual

    # per-vocab-tile final projection (Linear with bias)
    logits = jnp.dot(res.astype(jnp.bfloat16), wfc_ref[...],
                     preferred_element_type=jnp.float32) + bfc_ref[...]
    out_ref[...] = logits                                              # [S, TN]


def make_pos_mat(max_len, embedding_size):
    # mirrors pos_encoder.__init__
    position = jnp.arange(0, max_len, dtype=jnp.float32)[:, None]        # [L, 1]
    embedding_value = jnp.arange(0, embedding_size, 2, dtype=jnp.float32)
    div_term = 1.0 / (jnp.float32(100000.0) ** (embedding_value / embedding_size))
    pos_mat = jnp.zeros((max_len, embedding_size), dtype=jnp.float32)
    pos_mat = pos_mat.at[:, 0::2].set(jnp.sin(position * div_term))
    pos_mat = pos_mat.at[:, 1::2].set(jnp.cos(position * div_term))
    return pos_mat


def _pick_vocab_tile(vp, s, e):
    # Prefer the full padded vocab (single grid step), else the largest tile
    # whose double-buffered FC weight + bias + output comfortably fits a
    # conservative VMEM budget (safe on v5e/v6e/v7x, incl. v7x's 64 MiB).
    budget = 8 * 1024 * 1024
    for tn in (vp, 8192, 4096, 2048, 1024, 512, 256, 128):
        if tn <= vp and vp % tn == 0:
            need = 2 * (e * tn * 2 + s * tn * 4 + tn * 4)   # wfc bf16 + out f32 + bias f32, x2 buffers
            if need <= budget:
                return tn
    return 128


@jax.jit
def transformer_forward(x, emb_table, pos_mat, wq_t, wk_t, wv_t, wfc_t, bfc):
    S = x.shape[0]
    E = emb_table.shape[1]
    V = wfc_t.shape[1]

    # glue: embedding gather + positional add fused into a single [S, E] input.
    # TODO(synk): the nn.Embedding row gather could be pulled into the kernel via
    # PrefetchScalarGridSpec(num_scalar_prefetch=1) + a pl.Element(1) index_map,
    # but that forces an S-long grid axis; at these shapes the wrapper gather +
    # pre-add is the cheaper, simpler fusion.
    pos_in = (jnp.take(emb_table, x, axis=0).astype(jnp.float32)
              + pos_mat[:S, :].astype(jnp.float32))                    # [S, E]

    # fused QKV weight, bf16 (MXU-native)
    wqkv_t = jnp.concatenate([wq_t, wk_t, wv_t], axis=1).astype(jnp.bfloat16)  # [E, 3E]

    # lane-dense vocab: pad V to a multiple of 128 (unmasked vst's)
    LANE = 128
    Vp = ((V + LANE - 1) // LANE) * LANE
    wfc_p = jnp.zeros((E, Vp), jnp.bfloat16).at[:, :V].set(wfc_t.astype(jnp.bfloat16))
    bfc_p = jnp.zeros((1, Vp), jnp.float32).at[:, :V].set(bfc.reshape(1, V))

    TN = _pick_vocab_tile(Vp, S, E)
    grid = (Vp // TN,)

    out = pl.pallas_call(
        transformer_kernel,
        out_shape=jax.ShapeDtypeStruct((S, Vp), jnp.float32),
        grid_spec=pltpu.PrefetchScalarGridSpec(
            num_scalar_prefetch=0,
            grid=grid,
            in_specs=[
                pl.BlockSpec((S, E), lambda j: (0, 0)),        # emb + positional
                pl.BlockSpec((E, 3 * E), lambda j: (0, 0)),    # fused QKV weight
                pl.BlockSpec((E, TN), lambda j: (0, j)),       # fc weight tile
                pl.BlockSpec((1, TN), lambda j: (0, j)),       # fc bias tile
            ],
            out_specs=pl.BlockSpec((S, TN), lambda j: (0, j)),
        ),
        compiler_params=pltpu.CompilerParams(
            # attention + residual is recomputed per vocab tile (no cross-tile
            # state), so the vocab axis is truly parallel -> Mosaic may shard
            # it across both TensorCores on v7x.
            dimension_semantics=("parallel",),
            vmem_limit_bytes=32 * 1024 * 1024,
        ),
    )(pos_in, wqkv_t, wfc_p, bfc_p)

    if Vp == V:
        return out
    # For production-sized V, consume the padded [S, Vp] logits downstream and
    # ignore columns >= V instead of paying for this slice copy; here V is tiny.
    return out[:, :V]


if __name__ == "__main__":
    # small shapes consistent with the module
    SEQ = 8
    EMB = 32
    VOCAB = 64
    MAX_LEN = 1000

    key = jax.random.PRNGKey(0)
    k_emb, k_q, k_k, k_v, k_fc, k_b, k_x = jax.random.split(key, 7)

    # deterministic synthetic parameters
    emb_table = jax.random.normal(k_emb, (VOCAB, EMB), dtype=jnp.float32) * 0.1
    # nn.Linear stores W as [out, in]; we pass W.T = [in, out]
    wq_t = jax.random.normal(k_q, (EMB, EMB), dtype=jnp.float32) * 0.1
    wk_t = jax.random.normal(k_k, (EMB, EMB), dtype=jnp.float32) * 0.1
    wv_t = jax.random.normal(k_v, (EMB, EMB), dtype=jnp.float32) * 0.1
    wfc_t = jax.random.normal(k_fc, (EMB, VOCAB), dtype=jnp.float32) * 0.1
    bfc = jax.random.normal(k_b, (VOCAB,), dtype=jnp.float32) * 0.1

    pos_mat = make_pos_mat(MAX_LEN, EMB)

    # token ids
    x = jax.random.randint(k_x, (SEQ,), 0, VOCAB, dtype=jnp.int32)

    out = transformer_forward(x, emb_table, pos_mat, wq_t, wk_t, wv_t, wfc_t, bfc)
    out = jax.block_until_ready(out)

    # pure-JAX reference with matching precision (bf16 matmul operands, f32 accum)
    def bf16_dot(a, b):
        return jnp.dot(a.astype(jnp.bfloat16), b.astype(jnp.bfloat16),
                       preferred_element_type=jnp.float32)

    emb = jnp.take(emb_table, x, axis=0)
    pos = emb + pos_mat[:SEQ, :]
    q_r = bf16_dot(pos, wq_t)
    k_r = bf16_dot(pos, wk_t)
    v_r = bf16_dot(pos, wv_t)
    sim = bf16_dot(q_r, k_r.T)
    mask_ref = jnp.triu(jnp.ones((SEQ, SEQ), dtype=bool), k=1)
    sim = jnp.where(mask_ref, -1e9, sim)
    p_r = jax.nn.softmax(sim, axis=0)          # dim=0, as in the PyTorch module
    res = bf16_dot(p_r, v_r) + pos
    ref = bf16_dot(res, wfc_t) + bfc

    assert out.shape == (SEQ, VOCAB)
    assert jnp.allclose(out, ref, atol=2e-2, rtol=2e-2), (
        float(jnp.max(jnp.abs(out - ref))))
    print("KERNEL_OK")
</pallas_src>

<mosaic_0001>
module attributes {stable_mosaic.version = 11 : i64} {
  func.func @transformer_kernel(%arg0: i32, %arg1: memref<8x32xf32, #tpu.memory_space<vmem>>, %arg2: memref<32x96xbf16, #tpu.memory_space<vmem>>, %arg3: memref<32x128xbf16, #tpu.memory_space<vmem>>, %arg4: memref<1x128xf32, #tpu.memory_space<vmem>>, %arg5: memref<8x128xf32, #tpu.memory_space<vmem>>) attributes {dimension_semantics = [#tpu.dimension_semantics<parallel>], iteration_bounds = array<i64: 1>, scalar_prefetch = 0 : i64, scratch_operands = 0 : i64, tpu.core_type = #tpu.core_type<tc>, window_params = [{pipeline_mode = #tpu.pipeline_mode<synchronous>, transform_indices = @transform_0, window_bounds = array<i64: 8, 32>}, {pipeline_mode = #tpu.pipeline_mode<synchronous>, transform_indices = @transform_1, window_bounds = array<i64: 32, 96>}, {transform_indices = @transform_2, window_bounds = array<i64: 32, 128>}, {transform_indices = @transform_3, window_bounds = array<i64: 1, 128>}, {transform_indices = @transform_4, window_bounds = array<i64: 8, 128>}]} {
    %c0 = arith.constant 0 : index
    %c0_0 = arith.constant 0 : index
    %0 = vector.load %arg1[%c0, %c0_0] : memref<8x32xf32, #tpu.memory_space<vmem>>, vector<8x32xf32>
    %1 = arith.truncf %0 : vector<8x32xf32> to vector<8x32xbf16>
    %c0_1 = arith.constant 0 : index
    %c0_2 = arith.constant 0 : index
    %2 = vector.load %arg2[%c0_1, %c0_2] : memref<32x96xbf16, #tpu.memory_space<vmem>>, vector<32x96xbf16>
    %cst = arith.constant dense<0.000000e+00> : vector<8x96xf32>
    %3 = tpu.matmul %1, %2, %cst {dimension_numbers = #tpu.dot_dimension_numbers<[1], [0], [0], [1], [0, 0, 1, 1], [], []>} : vector<8x32xbf16>, vector<32x96xbf16>, vector<8x96xf32> -> vector<8x96xf32>
    %4 = vector.extract_strided_slice %3 {offsets = [0, 0], sizes = [8, 32], strides = [1, 1]} : vector<8x96xf32> to vector<8x32xf32>
    %5 = vector.extract_strided_slice %3 {offsets = [0, 32], sizes = [8, 32], strides = [1, 1]} : vector<8x96xf32> to vector<8x32xf32>
    %6 = vector.extract_strided_slice %3 {offsets = [0, 64], sizes = [8, 32], strides = [1, 1]} : vector<8x96xf32> to vector<8x32xf32>
    %7 = arith.truncf %4 : vector<8x32xf32> to vector<8x32xbf16>
    %8 = arith.truncf %5 : vector<8x32xf32> to vector<8x32xbf16>
    %cst_3 = arith.constant dense<0.000000e+00> : vector<8x8xf32>
    %9 = tpu.matmul %7, %8, %cst_3 {dimension_numbers = #tpu.dot_dimension_numbers<[1], [1], [0], [0], [0, 0, 1, 0], [], []>} : vector<8x32xbf16>, vector<8x32xbf16>, vector<8x8xf32> -> vector<8x8xf32>
    %10 = tpu.iota {dimensions = array<i32: 0>} : vector<8x8xi32>
    %11 = tpu.iota {dimensions = array<i32: 1>} : vector<8x8xi32>
    %12 = arith.cmpi sgt, %11, %10 : vector<8x8xi32>
    %cst_4 = arith.constant -1.000000e+09 : f32
    %13 = vector.broadcast %cst_4 : f32 to vector<8x8xf32>
    %14 = arith.select %12, %13, %9 : vector<8x8xi1>, vector<8x8xf32>
    %cst_5 = arith.constant dense<0xFF800000> : vector<8xf32>
    %15 = vector.multi_reduction <maximumf>, %14, %cst_5 [0] : vector<8x8xf32> to vector<8xf32>
    %16 = vector.shape_cast %15 : vector<8xf32> to vector<1x8xf32>
    %17 = vector.broadcast %16 : vector<1x8xf32> to vector<8x8xf32>
    %18 = arith.subf %14, %17 : vector<8x8xf32>
    %19 = math.exp %18 : vector<8x8xf32>
    %cst_6 = arith.constant dense<0.000000e+00> : vector<8xf32>
    %20 = vector.multi_reduction <add>, %19, %cst_6 [0] : vector<8x8xf32> to vector<8xf32>
    %21 = vector.shape_cast %20 : vector<8xf32> to vector<1x8xf32>
    %22 = tpu.reciprocal %21 {approx = true} : vector<1x8xf32> -> vector<1x8xf32>
    %23 = vector.broadcast %22 : vector<1x8xf32> to vector<8x8xf32>
    %24 = arith.mulf %19, %23 : vector<8x8xf32>
    %25 = arith.truncf %24 : vector<8x8xf32> to vector<8x8xbf16>
    %26 = arith.truncf %6 : vector<8x32xf32> to vector<8x32xbf16>
    %cst_7 = arith.constant dense<0.000000e+00> : vector<8x32xf32>
    %27 = tpu.matmul %25, %26, %cst_7 {dimension_numbers = #tpu.dot_dimension_numbers<[1], [0], [0], [1], [0, 0, 1, 1], [], []>} : vector<8x8xbf16>, vector<8x32xbf16>, vector<8x32xf32> -> vector<8x32xf32>
    %28 = arith.addf %27, %0 : vector<8x32xf32>
    %29 = arith.truncf %28 : vector<8x32xf32> to vector<8x32xbf16>
    %c0_8 = arith.constant 0 : index
    %c0_9 = arith.constant 0 : index
    %30 = vector.load %arg3[%c0_8, %c0_9] : memref<32x128xbf16, #tpu.memory_space<vmem>>, vector<32x128xbf16>
    %cst_10 = arith.constant dense<0.000000e+00> : vector<8x128xf32>
    %31 = tpu.matmul %29, %30, %cst_10 {dimension_numbers = #tpu.dot_dimension_numbers<[1], [0], [0], [1], [0, 0, 1, 1], [], []>} : vector<8x32xbf16>, vector<32x128xbf16>, vector<8x128xf32> -> vector<8x128xf32>
    %c0_11 = arith.constant 0 : index
    %c0_12 = arith.constant 0 : index
    %32 = vector.load %arg4[%c0_11, %c0_12] : memref<1x128xf32, #tpu.memory_space<vmem>>, vector<1x128xf32>
    %33 = vector.broadcast %32 : vector<1x128xf32> to vector<8x128xf32>
    %34 = arith.addf %31, %33 : vector<8x128xf32>
    %c0_13 = arith.constant 0 : index
    %c0_14 = arith.constant 0 : index
    %35 = vector.load %arg5[%c0_13, %c0_14] : memref<8x128xf32, #tpu.memory_space<vmem>>, vector<8x128xf32>
    tpu.vector_store %arg5[%c0_13, %c0_14], %34 {strides = array<i32>} : memref<8x128xf32, #tpu.memory_space<vmem>>, vector<8x128xf32>,
    return
  }
  func.func @transform_0(%arg0: i32) -> (i32, i32) {
    %c0_i32 = arith.constant 0 : i32
    %c0_i32_0 = arith.constant 0 : i32
    %c0_i32_1 = arith.constant 0 : i32
    return %c0_i32, %c0_i32_0 : i32, i32
  }
  func.func @transform_1(%arg0: i32) -> (i32, i32) {
    %c0_i32 = arith.constant 0 : i32
    %c0_i32_0 = arith.constant 0 : i32
    %c0_i32_1 = arith.constant 0 : i32
    return %c0_i32, %c0_i32_0 : i32, i32
  }
  func.func @transform_2(%arg0: i32) -> (i32, i32) {
    %c0_i32 = arith.constant 0 : i32
    %c0_i32_0 = arith.constant 0 : i32
    return %c0_i32, %arg0 : i32, i32
  }
  func.func @transform_3(%arg0: i32) -> (i32, i32) {
    %c0_i32 = arith.constant 0 : i32
    %c0_i32_0 = arith.constant 0 : i32
    return %c0_i32, %arg0 : i32, i32
  }
  func.func @transform_4(%arg0: i32) -> (i32, i32) {
    %c0_i32 = arith.constant 0 : i32
    %c0_i32_0 = arith.constant 0 : i32
    return %c0_i32, %arg0 : i32, i32
  }
}

</mosaic_0001>

<bundles_post_ra>
// kernel: transformer_forward.1
= control target key start
LH: loop header
LB: loop body
LE: loop exit
PB: predicated region body
PF: predicated region fallthrough
CT: control target
= control target key end

     0   :  { %v373_v1 = vmov 0.0   ;;  %vm374_vm0 = vmmov 0   ;;  %s449_s0 = inlined_call_operand.vmem [shape: f32[8,32], index: 0, kind: input, shape index: {}]   ;;  %s450_s1 = inlined_call_operand.vmem [shape: bf16[32,96], index: 1, kind: input, shape index: {}]   ;;  %s451_s2 = inlined_call_operand.vmem [shape: bf16[32,128], index: 2, kind: input, shape index: {}]   ;;  %s452_s3 = inlined_call_operand.vmem [shape: f32[1,128], index: 3, kind: input, shape index: {}]   ;;  %s453_s4 = inlined_call_operand.hbm [shape: f32[8,128], index: 4, kind: output, shape index: {}]  }
   0x1   :  { %v341_v0 = vld [vmem:[%s450_s1] sm:$0xff]   ;;  %308 = vmatprep.subr.bf16.mxu0 %v373_v1  ;;  %v342_v2 = vld [vmem:[%s450_s1 + $0x8] sm:$0xff]   ;;  %316 = vmatprep.subr.bf16.mxu1 %v373_v1 }
   0x2   :  { %309 = vmatpush3.bf16.msra.mxu0 %v341_v0  ;;  %312 = vmatprep.mubr.msk.bf16.mxu0 %vm374_vm0, %v373_v1  ;;  %v413_v3 = vld [vmem:[%s449_s0] sm:$0xff] }
   0x3   :  { %310 = vmatprep.subr.bf16.mxu0 %v373_v1  ;;  %318 = vmatprep.mubr.msk.bf16.mxu1 %vm374_vm0, %v373_v1 }
   0x4   :  { %9 = vsyncpa [#allocation3], 0  ;;  %v20_v4 = vpack.c.bf16 %v413_v3, %v413_v3  ;;  %vm37_vm1 = vcmask 261120   ;;  %s375_s0 = smov 96   ;;  %s376_s1 = smov 64   ;;  %vm163_vm2 = vcmask 1043456   ;;  %v131_v15 = vlaneseq }
   0x5   :  { %v343_v14 = vld [vmem:[%s451_s2] sm:$0xff]   ;;  %vm137_vm4 = vcmask 64512   ;;  %v344_v43 = vld [vmem:[%s451_s2 + $0x8] sm:$0xff]   ;;  %s377_s27 = smov [#allocation2]  }
   0x6   :  { %311 = vmatpush3.bf16.msra.mxu0 %v342_v2  ;;  %v132_v16 = vshrl.u32 %v131_v15, 7  ;;  %v134_v17 = vand.u32 127, %v131_v15  ;;  %v294_v50 = vld [vmem:[%s452_s3] ss:$0 sm:$0xff]  ;;  %s281_s28 = sshll.u32 %s377_s27, 4  ;;  %s282_s28 = int_to_ptr.vmem [resolvable:$true] %s281_s28 }
   0x7   :  { %322 = vmatprep.subr.bf16.mxu0 %v373_v1  ;;  %s349_s2 = scalar_lea.vmem %s282_s28, 128  ;;  %p354_p1 = scmp.lt.s32.totalorder %s282_s28, %s282_s28 }
   0x8   :  { %vm135_vm3 = vcmp.gt.s32.totalorder %v134_v17, %v132_v16  ;;  %p350_p0 = scmp.ne.s32.totalorder %s282_s28, %s349_s2  ;;  %p355_p2 = scmp.lt.s32.totalorder %s349_s2, %s349_s2 }
   0x9   :  { %313 = vmatmul.mubr.msk.bf16.vlgmr.msra.gmra.mrb[0].mxu0 %vm37_vm1, %v20_v4 }
   0xa   :  { %324 = vmatprep.mubr.msk.bf16.mxu0 %vm374_vm0, %v373_v1  ;;  %p356_p3 = por %p355_p2, %p354_p1 }
   0xc   :  { %p357_p4 = pnand %p356_p3, %p350_p0 }
  0xdc   :  { %v75_v5 = vpop.f32.mrb[0].mxu0 }
  0xdd   :  { %v81_v6 = vpack.c.bf16 %v75_v5, %v75_v5  ;;  %v314_v7 = vpop.f32.mrb[1].mxu0 }
  0xde   :  { %v78_v8 = vpop.f32.mrb[2].mxu0 }
  0xdf   :  { %83 = vrot.lane.b32.xlu0 %v81_v6, %s375_s0  ;;  %v315_v9 = vpop.f32.mrb[3].mxu0 }
  0xe3   :  { %158 = vrot.lane.b32.xlu0 %v81_v6, %s376_s1 }
 0x151   :  { %v84_v10 = vpop.permute.xlu0 %83 }
 0x152   :  { %v89_v11 = vsel %vm37_vm1, %v84_v10, 0 }
 0x153   :  { %317 = vmatpush3.bf16.xpose.msra.mxu1 %v89_v11 }
 0x154   :  { %328 = vmatprep.subr.bf16.mxu1 %v373_v1 }
 0x155   :  { %v159_v12 = vpop.permute.xlu0 %158 }
 0x156   :  { %v165_v13 = vsel %vm163_vm2, %v159_v12, 0 }
 0x157   :  { %323 = vmatpush3.bf16.msra.mxu0 %v165_v13 }
 0x15a   :  { %319 = vmatmul.mubr.msk.bf16.vlgmr.msra.gmra.mrb[0].mxu1 %vm37_vm1, %v81_v6 }
 0x15b   :  { %332 = vmatprep.mubr.msk.bf16.mxu1 %vm374_vm0, %v373_v1  ;;  %329 = vmatpush3.bf16.msra.mxu1 %v343_v14 }
 0x15c   :  { %330 = vmatprep.subr.bf16.mxu1 %v373_v1 }
 0x15f   :  { %331 = vmatpush3.bf16.msra.mxu1 %v344_v43 }
 0x22d   :  { %v125_v18 = vpop.f32.mrb[0].mxu1 }
 0x22e   :  { %v136_v19 = vsel %vm135_vm3, -1e+09, %v125_v18  ;;  %v320_v20 = vpop.f32.mrb[1].mxu1 }
 0x22f   :  { %v138_v21 = vsel %vm137_vm4, %v136_v19, -inf  ;;  %v128_v22 = vpop.f32.mrb[2].mxu1 }
 0x230   :  { %v139_v23 = vrot.slane %v138_v21, 4  ;;  %v321_v24 = vpop.f32.mrb[3].mxu1 }
 0x232   :  { %v140_v25 = vmax.f32 %v138_v21, %v139_v23 }
 0x234   :  { %v141_v26 = vrot.slane %v140_v25, 2 }
 0x236   :  { %v142_v27 = vmax.f32 %v140_v25, %v141_v26 }
 0x238   :  { %v143_v28 = vrot.slane %v142_v27, 1 }
 0x23a   :  { %v144_v29 = vmax.f32 %v142_v27, %v143_v28 }
 0x23c   :  { %v145_v30 = vsub.f32 %v136_v19, %v144_v29 }
 0x23e   :  { %v146_v31 = vmul.f32 1.442695, %v145_v30 }
 0x240   :  { %345 = vpow2.f32 %v146_v31 }
 0x24a   :  { %v346_v32 = vpop.eup %345 }
 0x24b   :  { %v148_v33 = vsel %vm137_vm4, %v346_v32, 0.0 }
 0x24c   :  { %v149_v34 = vrot.slane %v148_v33, 4 }
 0x24e   :  { %v150_v35 = vadd.f32 %v149_v34, %v148_v33 }
 0x250   :  { %v151_v36 = vrot.slane %v150_v35, 2 }
 0x252   :  { %v152_v37 = vadd.f32 %v151_v36, %v150_v35 }
 0x254   :  { %v153_v38 = vrot.slane %v152_v37, 1 }
 0x256   :  { %v154_v39 = vadd.f32 %v153_v38, %v152_v37 }
 0x258   :  { %347 = vrcp.f32 %v154_v39 }
 0x262   :  { %v348_v40 = vpop.eup %347 }
 0x263   :  { %v156_v41 = vmul.f32 %v348_v40, %v346_v32 }
 0x265   :  { %v157_v42 = vpack.c.bf16 %v156_v41, %v156_v41 }
 0x267   :  { %325 = vmatmul.mubr.msk.bf16.vlgmr.msra.gmra.mrb[4].mxu0 %vm137_vm4, %v157_v42 }
 0x33a   :  { %v201_v44 = vpop.f32.mrb[4].mxu0 }
 0x33b   :  { %v202_v45 = vadd.f32 %v201_v44, %v413_v3  ;;  %v326_v46 = vpop.f32.mrb[5].mxu0 }
 0x33c   :  { %v204_v47 = vpop.f32.mrb[6].mxu0 }
 0x33d   :  { %v207_v48 = vpack.c.bf16 %v202_v45, %v202_v45  ;;  %v327_v49 = vpop.f32.mrb[7].mxu0 }
 0x33f   :  { %333 = vmatmul.mubr.msk.bf16.vlgmr.msra.gmra.mrb[4].mxu1 %vm37_vm1, %v207_v48 }
 0x412   :  { %v268_v51 = vpop.f32.mrb[4].mxu1 }
 0x413   :  { %v269_v52 = vadd.f32 %v294_v50, %v268_v51  ;;  %v334_v53 = vpop.f32.mrb[5].mxu1 }
 0x414   :  { %v271_v54 = vpop.f32.mrb[6].mxu1 }
 0x415   :  { %274 = vst [vmem:[#allocation2] sm:$0xff] %v269_v52  ;;  %v335_v55 = vpop.f32.mrb[7].mxu1 }
 0x416   :  { %360 = shalt.err (!%p357_p4)
}
 0x417   :  { %s361_s3 = scalar_lea.hbm %s453_s4, 128 }
 0x418   :  { %p362_p5 = scmp.ne.s32.totalorder %s453_s4, %s361_s3  ;;  %p365_p6 = scmp.lt.u32.totalorder %s361_s3, %s453_s4 }
 0x41a   :  { %p367_p7 = pnand %p365_p6, %p362_p5 }
 0x41c   :  { %370 = shalt.err (!%p367_p7)
}
 0x41d   :  { %284 = dma.vmem_to_hbm [thread:$0]  %s282_s28, 128, %s453_s4, [#allocation3]  }
 0x41e   :  { %371 = dma.done.wait [#allocation3], 128  }
 0x41f   :  { %372 = vsyncadd [#allocation3], 4294967168 }
 0x420   :  { %288 = vsyncpa [#allocation3], 1 }

</bundles_post_ra>
